<compile_context>
chip_gen: v5e
topology: v5e:2x2
jax: 0.10.0
libtpu: 0.0.40
codegen_flags: <defaults>
</compile_context>

<pallas_src>
import functools

import jax
import jax.numpy as jnp
from jax.experimental import pallas as pl
from jax.experimental.pallas import tpu as pltpu


def _fused_kernel(x1_ref, x2_ref, inp_ref, out_ref, *, n):
    # x1_ref : (KP, KP)   zero-padded x1 (matmul RHS; lane/sublane aligned)
    # x2_ref : (MS, KP)   zero-padded x2 rows
    # inp_ref: (B, n, n)  batch tensor at its true (unpadded) shape
    # out_ref: (B, n, n)
    ms = x2_ref.shape[0]
    lhs = x1_ref[:ms, :]                                   # (MS, KP) first rows of x1
    m1 = jnp.dot(lhs, x1_ref[...],
                 preferred_element_type=jnp.float32)       # (MS, KP) = x1 @ x1 (padded)
    b1 = m1 + lhs + x2_ref[...]                            # (MS, KP) = x1@x1 + x1 + x2
    b1_nn = b1[:n, :n]                                     # keep the valid (n, n) corner
    out_ref[...] = inp_ref[...] + b1_nn[None, :, :]        # broadcast over batch


def fused_model(x1, x2, inp):
    """out = (x1 @ x1) + (x1 + x2) + inp   (broadcast over inp's batch dim)."""
    N = x1.shape[0]
    B = inp.shape[0]
    f32 = jnp.float32

    KP = pl.cdiv(N, 128) * 128   # lane-aligned contraction / matmul-lane pad
    MS = pl.cdiv(N, 8) * 8       # sublane-aligned pad for the rows we actually use

    # Tiny one-off pads of the (N, N) operands only; zero padding keeps the
    # matmul exact in the top-left (N, N) corner.
    x1p = jnp.pad(x1.astype(f32), ((0, KP - N), (0, KP - N)))
    x2p = jnp.pad(x2.astype(f32), ((0, MS - N), (0, KP - N)))
    inp = inp.astype(f32)

    return pl.pallas_call(
        functools.partial(_fused_kernel, n=N),
        out_shape=jax.ShapeDtypeStruct((B, N, N), f32),
        # No grid: single invocation, whole (tiny) arrays resident in VMEM.
        in_specs=[
            pl.BlockSpec(memory_space=pltpu.MemorySpace.VMEM),  # x1 (padded, full)
            pl.BlockSpec(memory_space=pltpu.MemorySpace.VMEM),  # x2 (padded, full)
            pl.BlockSpec(memory_space=pltpu.MemorySpace.VMEM),  # inp (true shape, full)
        ],
        out_specs=pl.BlockSpec(memory_space=pltpu.MemorySpace.VMEM),
    )(x1p, x2p, inp)


if __name__ == "__main__":
    key = jax.random.PRNGKey(0)
    k1, k2, k3 = jax.random.split(key, 3)

    # Shapes implied by the PyTorch module: x1, x2 -> (3, 3); inp -> (3, 3, 3)
    x1 = jax.random.normal(k1, (3, 3), dtype=jnp.float32)
    x2 = jax.random.normal(k2, (3, 3), dtype=jnp.float32)
    inp = jax.random.normal(k3, (3, 3, 3), dtype=jnp.float32)

    out = fused_model(x1, x2, inp)
    out = jax.block_until_ready(out)

    # Pure-JAX reference check.
    ref = (x1 @ x1) + (x1 + x2) + inp
    assert out.shape == ref.shape
    assert jnp.allclose(out, ref, atol=1e-5, rtol=1e-5), "mismatch vs reference"

    print("KERNEL_OK")
</pallas_src>

<mosaic_0001>
module attributes {stable_mosaic.version = 11 : i64} {
  func.func @_fused_kernel(%arg0: memref<128x128xf32, #tpu.memory_space<vmem>>, %arg1: memref<8x128xf32, #tpu.memory_space<vmem>>, %arg2: memref<3x3x3xf32, #tpu.memory_space<vmem>>, %arg3: memref<3x3x3xf32, #tpu.memory_space<vmem>>) attributes {dimension_semantics = [], scalar_prefetch = 0 : i64, scratch_operands = 0 : i64, tpu.core_type = #tpu.core_type<tc>} {
    %c0 = arith.constant 0 : index
    %c0_0 = arith.constant 0 : index
    %0 = vector.load %arg0[%c0, %c0_0] : memref<128x128xf32, #tpu.memory_space<vmem>>, vector<8x128xf32>
    %c0_1 = arith.constant 0 : index
    %c0_2 = arith.constant 0 : index
    %1 = vector.load %arg0[%c0_1, %c0_2] : memref<128x128xf32, #tpu.memory_space<vmem>>, vector<128x128xf32>
    %cst = arith.constant dense<0.000000e+00> : vector<8x128xf32>
    %2 = tpu.matmul %0, %1, %cst {dimension_numbers = #tpu.dot_dimension_numbers<[1], [0], [0], [1], [0, 0, 1, 1], [], []>} : vector<8x128xf32>, vector<128x128xf32>, vector<8x128xf32> -> vector<8x128xf32>
    %3 = arith.addf %2, %0 : vector<8x128xf32>
    %c0_3 = arith.constant 0 : index
    %c0_4 = arith.constant 0 : index
    %4 = vector.load %arg1[%c0_3, %c0_4] : memref<8x128xf32, #tpu.memory_space<vmem>>, vector<8x128xf32>
    %5 = arith.addf %3, %4 : vector<8x128xf32>
    %6 = vector.extract_strided_slice %5 {offsets = [0, 0], sizes = [3, 3], strides = [1, 1]} : vector<8x128xf32> to vector<3x3xf32>
    %c0_5 = arith.constant 0 : index
    %c0_6 = arith.constant 0 : index
    %c0_7 = arith.constant 0 : index
    %7 = vector.load %arg2[%c0_5, %c0_6, %c0_7] : memref<3x3x3xf32, #tpu.memory_space<vmem>>, vector<3x3x3xf32>
    %8 = vector.shape_cast %6 : vector<3x3xf32> to vector<1x3x3xf32>
    %9 = vector.broadcast %8 : vector<1x3x3xf32> to vector<3x3x3xf32>
    %10 = arith.addf %7, %9 : vector<3x3x3xf32>
    %c0_8 = arith.constant 0 : index
    %c0_9 = arith.constant 0 : index
    %c0_10 = arith.constant 0 : index
    %11 = vector.load %arg3[%c0_8, %c0_9, %c0_10] : memref<3x3x3xf32, #tpu.memory_space<vmem>>, vector<3x3x3xf32>
    tpu.vector_store %arg3[%c0_8, %c0_9, %c0_10], %10 {strides = array<i32>} : memref<3x3x3xf32, #tpu.memory_space<vmem>>, vector<3x3x3xf32>,
    return
  }
}

</mosaic_0001>

<bundles_post_ra>
// kernel: tpu_custom_call.1
= control target key start
LH: loop header
LB: loop body
LE: loop exit
PB: predicated region body
PF: predicated region fallthrough
CT: control target
= control target key end

     0   :  { %8 = vsyncpa [#allocation3], 0  ;;  %s285_s0 = inlined_call_operand.hbm [shape: f32[128,128], index: 0, kind: input, shape index: {}]   ;;  %s286_s1 = inlined_call_operand.hbm [shape: f32[8,128], index: 1, kind: input, shape index: {}]   ;;  %s287_s2 = inlined_call_operand.hbm [shape: f32[3,3,3], index: 2, kind: input, shape index: {}]   ;;  %s288_s3 = inlined_call_operand.hbm [shape: f32[3,3,3], index: 3, kind: output, shape index: {}]  }
   0x1   :  { %9 = vsyncpa [#allocation6], 0  ;;  %s29_s14 = sshll.u32 %s286_s1, 4  ;;  %s30_s14 = int_to_ptr.hbm [resolvable:$true] %s29_s14 }
   0x2   :  { %10 = vsyncpa [#allocation4], 0  ;;  %s239_s15 = smov [#allocation5]   ;;  %s15_s19 = sshll.u32 %s285_s0, 4  ;;  %s16_s19 = int_to_ptr.hbm [resolvable:$true] %s15_s19 }
   0x3   :  { %s31_s16 = sshll.u32 %s239_s15, 4  ;;  %s240_s20 = smov [#allocation2]   ;;  %s32_s16 = int_to_ptr.vmem [resolvable:$true] %s31_s16 }
   0x4   :  { %34 = dma.hbm_to_vmem [thread:$0]  %s30_s14, 128, %s32_s16, [#allocation6]  }
   0x5   :  { %s17_s21 = sshll.u32 %s240_s20, 4  ;;  %s241_s22 = smov 128   ;;  %s18_s21 = int_to_ptr.vmem [resolvable:$true] %s17_s21 }
   0x6   :  { %s242_s23 = smov 8   ;;  %s39_s1 = sshll.u32 %s287_s2, 4  ;;  %s40_s1 = int_to_ptr.hbm [resolvable:$true] %s39_s1 }
   0x7   :  { %23 = dma.hbm_to_vmem [thread:$0]  %s16_s19, 2048, %s18_s21, [#allocation3], %s241_s22, %s241_s22, %s242_s23  }
   0x8   :  { %s243_s26 = smov [#allocation7]   ;;  %s244_s28 = smov 64  }
   0x9   :  { %s41_s27 = sshll.u32 %s243_s26, 4  ;;  %s245_s29 = smov 4   ;;  %s42_s27 = int_to_ptr.vmem [resolvable:$true] %s41_s27 }
   0xa   :  { %47 = dma.hbm_to_vmem [thread:$0]  %s40_s1, 192, %s42_s27, [#allocation6], %s244_s28, %s244_s28, %s245_s29  }
   0xb   :  { %233 = dma.done.wait [#allocation3], 2048  }
   0xc   :  { %234 = vsyncadd [#allocation3], 4294965248 }
   0xd   :  { %235 = dma.done.wait [#allocation6], 320  }
   0xe   :  { %236 = vsyncadd [#allocation6], 4294966976  ;;  %v76_v0 = vld [vmem:[#allocation2 + $0x78] sm:$0xff]  ;;  %v75_v1 = vld [vmem:[#allocation2 + $0x70] sm:$0xff]  ;;  %vm105_vm0 = vcmask 18432   ;;  %s246_s0 = smov [#allocation8]  }
   0xf   :  { %77 = vmatpush.msra.mxu0 %v76_v0  ;;  %v74_v2 = vld [vmem:[#allocation2 + $0x68] sm:$0xff]  ;;  %v73_v3 = vld [vmem:[#allocation2 + $0x60] sm:$0xff]  ;;  %v72_v4 = vld [vmem:[#allocation2 + $0x58] sm:$0xff]  ;;  %s113_s2 = sshll.u32 %s246_s0, 4  ;;  %s115_s5 = sshll.u32 %s288_s3, 4  ;;  %s114_s2 = int_to_ptr.vmem [resolvable:$true] %s113_s2  ;;  %s116_s5 = int_to_ptr.hbm [resolvable:$true] %s115_s5 }
  0x10   :  { %v71_v5 = vld [vmem:[#allocation2 + $0x50] sm:$0xff]  ;;  %v70_v6 = vld [vmem:[#allocation2 + $0x48] sm:$0xff]  ;;  %v69_v7 = vld [vmem:[#allocation2 + $0x40] sm:$0xff] }
  0x11   :  { %78 = vmatpush.msra.mxu0 %v75_v1  ;;  %v68_v8 = vld [vmem:[#allocation2 + $0x38] sm:$0xff]  ;;  %v67_v9 = vld [vmem:[#allocation2 + $0x30] sm:$0xff]  ;;  %v66_v10 = vld [vmem:[#allocation2 + $0x28] sm:$0xff] }
  0x12   :  { %v65_v11 = vld [vmem:[#allocation2 + $0x20] sm:$0xff]  ;;  %v64_v12 = vld [vmem:[#allocation2 + $0x18] sm:$0xff]  ;;  %v63_v13 = vld [vmem:[#allocation2 + $0x10] sm:$0xff] }
  0x13   :  { %79 = vmatpush.msra.mxu0 %v74_v2  ;;  %v62_v14 = vld [vmem:[#allocation2 + $0x8] sm:$0xff]  ;;  %v61_v15 = vld [vmem:[#allocation2] sm:$0xff]  ;;  %v101_v21 = vld [vmem:[#allocation7 + $0x8] sm:$0x7] }
  0x14   :  { %v97_v17 = vld [vmem:[#allocation5] sm:$0xff]  ;;  %v99_v19 = vld [vmem:[#allocation7] sm:$0x7]  ;;  %v100_v20 = vld [vmem:[#allocation7 + $0x4] sm:$0x7] }
  0x15   :  { %80 = vmatpush.msra.mxu0 %v73_v3 }
  0x17   :  { %81 = vmatpush.msra.mxu0 %v72_v4 }
  0x19   :  { %82 = vmatpush.msra.mxu0 %v71_v5 }
  0x1b   :  { %83 = vmatpush.msra.mxu0 %v70_v6 }
  0x1d   :  { %84 = vmatpush.msra.mxu0 %v69_v7 }
  0x1f   :  { %85 = vmatpush.msra.mxu0 %v68_v8 }
  0x21   :  { %86 = vmatpush.msra.mxu0 %v67_v9 }
  0x23   :  { %87 = vmatpush.msra.mxu0 %v66_v10 }
  0x25   :  { %88 = vmatpush.msra.mxu0 %v65_v11 }
  0x27   :  { %89 = vmatpush.msra.mxu0 %v64_v12 }
  0x29   :  { %90 = vmatpush.msra.mxu0 %v63_v13 }
  0x2b   :  { %91 = vmatpush.msra.mxu0 %v62_v14 }
  0x2d   :  { %92 = vmatpush.msra.mxu0 %v61_v15 }
  0x2e   :  { %93 = vmatmul.f32.vlgmr.msra.gmra.mxu0 %v61_v15 }
  0xab   :  { %v94_v16 = vpop.f32.mrf.mxu0 }
  0xac   :  { %v95_v18 = vadd.f32 %v94_v16, %v61_v15 }
  0xae   :  { %v98_v22 = vadd.f32 %v97_v17, %v95_v18 }
  0xb0   :  { %v102_v23 = vadd.f32 %v99_v19, %v98_v22  ;;  %v103_v24 = vadd.f32 %v100_v20, %v98_v22  ;;  %v104_v25 = vadd.f32 %v101_v21, %v98_v22 }
  0xb2   :  { %106 = vst.msk [vmem:[#allocation8] sm:$0x7] %vm105_vm0, %v102_v23 }
  0xb3   :  { %107 = vst.msk [vmem:[#allocation8 + $0x4] sm:$0x7] %vm105_vm0, %v103_v24 }
  0xb4   :  { %108 = vst.msk [vmem:[#allocation8 + $0x8] sm:$0x7] %vm105_vm0, %v104_v25 }
  0xb5   :  { %121 = dma.vmem_to_hbm [thread:$0]  %s114_s2, 192, %s116_s5, [#allocation4], %s244_s28, %s244_s28, %s245_s29  }
  0xb6   :  { %237 = dma.done.wait [#allocation4], 192  }
  0xb7   :  { %238 = vsyncadd [#allocation4], 4294967104 }
  0xb8   :  { %126 = vsyncpa [#allocation3], 1 }
  0xb9   :  { %127 = vsyncpa [#allocation6], 1 }
  0xba   :  { %128 = vsyncpa [#allocation4], 1 }

</bundles_post_ra>
